<compile_context>
chip_gen: v5e
topology: v5e:2x2
jax: 0.10.0
libtpu: 0.0.40
codegen_flags: <defaults>
</compile_context>

<pallas_src>
import functools

import jax
import jax.numpy as jnp
from jax.experimental import pallas as pl
from jax.experimental.pallas import tpu as pltpu


def _net_kernel(boolean_var, x_ref, y_ref, wb_ref, out_ref):
    # Lane-concat x|y (XLU/copy work, separate slot from the MXU push).
    xy = jnp.concatenate([x_ref[...], y_ref[...]], axis=1)          # (B, 8)

    w = wb_ref[0:8, :]                                              # (8, 16) folded weights
    b = wb_ref[8:9, :]                                              # (1, 16) folded biases

    # Single depth-1 MXU push: yields [x1 | y1 | z | fc4(z)].
    r = jnp.dot(xy, w, preferred_element_type=jnp.float32) + b      # (B, 16)

    x1 = r[:, 0:4]
    y1 = r[:, 4:8]
    z = r[:, 8:12]
    f4 = r[:, 12:16]

    out_ref[2, :, :] = z.astype(out_ref.dtype)
    if boolean_var:                        # static (trace-time) branch
        out_ref[0, :, :] = f4.astype(out_ref.dtype)
        out_ref[1, :, :] = y1.astype(out_ref.dtype)
    else:
        out_ref[0, :, :] = x1.astype(out_ref.dtype)
        out_ref[1, :, :] = f4.astype(out_ref.dtype)


def pack_params(w1, b1, w2, b2, w3, b3, w4, b4):
    """One-time init-time folding.  Weights are (in, out) (= torch W.T),
    biases are (1, out).  Returns a single (9, 16) packed param array."""
    feat = w1.shape[0]
    w34 = w3 @ w4                              # fc4 ∘ fc3 weight
    b34 = b3 @ w4 + b4                         # fc4 ∘ fc3 bias
    zero = jnp.zeros((feat, feat), w1.dtype)
    wp = jnp.block([
        [w1,   zero, w1 @ w3, w1 @ w34],
        [zero, w2,   w2 @ w3, w2 @ w34],
    ])                                         # (8, 16)
    bp = jnp.concatenate(
        [b1, b2, (b1 + b2) @ w3 + b3, (b1 + b2) @ w34 + b34], axis=1)  # (1, 16)
    return jnp.concatenate([wp, bp], axis=0)   # (9, 16)


def net_forward(x, y, packed_params, boolean_var=False):
    """packed_params: (9, 16) from pack_params()."""
    B, feat = x.shape
    vmem = pl.BlockSpec(memory_space=pltpu.MemorySpace.VMEM)
    kernel = functools.partial(_net_kernel, bool(boolean_var))

    packed = pl.pallas_call(
        kernel,
        out_shape=jax.ShapeDtypeStruct((3, B, feat), x.dtype),
        in_specs=[vmem, vmem, vmem],
        out_specs=vmem,
        cost_estimate=pl.CostEstimate(
            flops=2 * B * (2 * feat) * (4 * feat),          # ~2048
            transcendentals=0,
            bytes_accessed=4 * (x.size + y.size + packed_params.size
                                + 3 * B * feat),            # ~1.2 KB
        ),
    )(x, y, packed_params)

    # Cheap wrapper-side split of the single packed output.
    return ({'x': packed[0], 'y': packed[1]}, packed[2])


def init_linear(key, in_f, out_f):
    # torch.nn.Linear default init: U(-1/sqrt(in), 1/sqrt(in)) for W and b.
    k = 1.0 / jnp.sqrt(jnp.float32(in_f))
    kw, kb = jax.random.split(key)
    w = jax.random.uniform(kw, (in_f, out_f), jnp.float32, -k, k)  # (in, out)
    b = jax.random.uniform(kb, (1, out_f), jnp.float32, -k, k)
    return w, b


def reference_forward(x, y, params, boolean_var=False):
    # Un-fused math, faithful to the original torch module.
    w1, b1, w2, b2, w3, b3, w4, b4 = params
    x1 = x @ w1 + b1
    y1 = y @ w2 + b2
    z = (x1 + y1) @ w3 + b3
    f4 = z @ w4 + b4
    if boolean_var:
        return ({'x': f4, 'y': y1}, z)
    return ({'x': x1, 'y': f4}, z)


if __name__ == "__main__":
    B, feat = 8, 4                         # Linear(4, 4); batch of 8 rows

    key = jax.random.PRNGKey(0)
    k1, k2, k3, k4, kx, ky = jax.random.split(key, 6)

    w1, b1 = init_linear(k1, feat, feat)
    w2, b2 = init_linear(k2, feat, feat)
    w3, b3 = init_linear(k3, feat, feat)
    w4, b4 = init_linear(k4, feat, feat)
    params = (w1, b1, w2, b2, w3, b3, w4, b4)
    packed_params = pack_params(*params)   # one-time folding, (9, 16)

    x = jax.random.normal(kx, (B, feat), jnp.float32)
    y = jax.random.normal(ky, (B, feat), jnp.float32)

    ok = True
    for boolean_var in (False, True):
        d, z = net_forward(x, y, packed_params, boolean_var=boolean_var)
        d = {k: jax.block_until_ready(v) for k, v in d.items()}
        z = jax.block_until_ready(z)

        d_ref, z_ref = reference_forward(x, y, params, boolean_var=boolean_var)

        ok &= d['x'].shape == (B, feat) and d['y'].shape == (B, feat)
        ok &= z.shape == (B, feat)
        ok &= bool(jnp.allclose(d['x'], d_ref['x'], rtol=1e-5, atol=1e-5))
        ok &= bool(jnp.allclose(d['y'], d_ref['y'], rtol=1e-5, atol=1e-5))
        ok &= bool(jnp.allclose(z, z_ref, rtol=1e-5, atol=1e-5))

    assert ok, "mismatch vs JAX reference"
    print("KERNEL_OK")
</pallas_src>

<mosaic_0001>
module attributes {stable_mosaic.version = 11 : i64} {
  func.func @_net_kernel(%arg0: memref<8x4xf32, #tpu.memory_space<vmem>>, %arg1: memref<8x4xf32, #tpu.memory_space<vmem>>, %arg2: memref<9x16xf32, #tpu.memory_space<vmem>>, %arg3: memref<3x8x4xf32, #tpu.memory_space<vmem>>) attributes {dimension_semantics = [], scalar_prefetch = 0 : i64, scratch_operands = 0 : i64, tpu.core_type = #tpu.core_type<tc>} {
    %c0 = arith.constant 0 : index
    %c0_0 = arith.constant 0 : index
    %0 = vector.load %arg0[%c0, %c0_0] : memref<8x4xf32, #tpu.memory_space<vmem>>, vector<8x4xf32>
    %c0_1 = arith.constant 0 : index
    %c0_2 = arith.constant 0 : index
    %1 = vector.load %arg1[%c0_1, %c0_2] : memref<8x4xf32, #tpu.memory_space<vmem>>, vector<8x4xf32>
    %2 = tpu.concatenate %0, %1 in 1 : vector<8x4xf32>, vector<8x4xf32> -> vector<8x8xf32>
    %c0_3 = arith.constant 0 : index
    %c0_4 = arith.constant 0 : index
    %3 = vector.load %arg2[%c0_3, %c0_4] : memref<9x16xf32, #tpu.memory_space<vmem>>, vector<8x16xf32>
    %c8 = arith.constant 8 : index
    %c0_5 = arith.constant 0 : index
    %4 = vector.load %arg2[%c8, %c0_5] : memref<9x16xf32, #tpu.memory_space<vmem>>, vector<1x16xf32>
    %cst = arith.constant dense<0.000000e+00> : vector<8x16xf32>
    %5 = tpu.matmul %2, %3, %cst {dimension_numbers = #tpu.dot_dimension_numbers<[1], [0], [0], [1], [0, 0, 1, 1], [], []>} : vector<8x8xf32>, vector<8x16xf32>, vector<8x16xf32> -> vector<8x16xf32>
    %6 = vector.broadcast %4 : vector<1x16xf32> to vector<8x16xf32>
    %7 = arith.addf %5, %6 : vector<8x16xf32>
    %8 = vector.extract_strided_slice %7 {offsets = [0, 0], sizes = [8, 4], strides = [1, 1]} : vector<8x16xf32> to vector<8x4xf32>
    %9 = vector.extract_strided_slice %7 {offsets = [0, 8], sizes = [8, 4], strides = [1, 1]} : vector<8x16xf32> to vector<8x4xf32>
    %10 = vector.extract_strided_slice %7 {offsets = [0, 12], sizes = [8, 4], strides = [1, 1]} : vector<8x16xf32> to vector<8x4xf32>
    %c2 = arith.constant 2 : index
    %c0_6 = arith.constant 0 : index
    %c0_7 = arith.constant 0 : index
    %11 = vector.load %arg3[%c2, %c0_6, %c0_7] : memref<3x8x4xf32, #tpu.memory_space<vmem>>, vector<1x8x4xf32>
    %12 = vector.shape_cast %11 : vector<1x8x4xf32> to vector<8x4xf32>
    %13 = vector.shape_cast %9 : vector<8x4xf32> to vector<1x8x4xf32>
    tpu.vector_store %arg3[%c2, %c0_6, %c0_7], %13 {strides = array<i32>} : memref<3x8x4xf32, #tpu.memory_space<vmem>>, vector<1x8x4xf32>,
    %c0_8 = arith.constant 0 : index
    %c0_9 = arith.constant 0 : index
    %c0_10 = arith.constant 0 : index
    %14 = vector.load %arg3[%c0_8, %c0_9, %c0_10] : memref<3x8x4xf32, #tpu.memory_space<vmem>>, vector<1x8x4xf32>
    %15 = vector.shape_cast %14 : vector<1x8x4xf32> to vector<8x4xf32>
    %16 = vector.shape_cast %8 : vector<8x4xf32> to vector<1x8x4xf32>
    tpu.vector_store %arg3[%c0_8, %c0_9, %c0_10], %16 {strides = array<i32>} : memref<3x8x4xf32, #tpu.memory_space<vmem>>, vector<1x8x4xf32>,
    %c1 = arith.constant 1 : index
    %c0_11 = arith.constant 0 : index
    %c0_12 = arith.constant 0 : index
    %17 = vector.load %arg3[%c1, %c0_11, %c0_12] : memref<3x8x4xf32, #tpu.memory_space<vmem>>, vector<1x8x4xf32>
    %18 = vector.shape_cast %17 : vector<1x8x4xf32> to vector<8x4xf32>
    %19 = vector.shape_cast %10 : vector<8x4xf32> to vector<1x8x4xf32>
    tpu.vector_store %arg3[%c1, %c0_11, %c0_12], %19 {strides = array<i32>} : memref<3x8x4xf32, #tpu.memory_space<vmem>>, vector<1x8x4xf32>,
    return
  }
}

</mosaic_0001>

<bundles_post_ra>
// kernel: tpu_custom_call.1
= control target key start
LH: loop header
LB: loop body
LE: loop exit
PB: predicated region body
PF: predicated region fallthrough
CT: control target
= control target key end

     0   :  { %s72_s14 = smov 4   ;;  %vm20_vm0 = vcmask 31744   ;;  %vm25_vm1 = vcmask 64512   ;;  %s74_s21 = smov 120   ;;  %s120_s1 = inlined_call_operand.vmem [shape: f32[8,4], index: 1, kind: input, shape index: {}]   ;;  %s121_s2 = inlined_call_operand.vmem [shape: f32[9,16], index: 2, kind: input, shape index: {}]   ;;  %s122_s0 = inlined_call_operand.vmem [shape: f32[8,4], index: 0, kind: input, shape index: {}]   ;;  %s123_s3 = inlined_call_operand.vmem [shape: f32[3,8,4], index: 3, kind: output, shape index: {}]  }
   0x1   :  { %v15_v0 = vld [vmem:[%s120_s1] sm:$0xff]  ;;  %v71_v5 = vld [vmem:[%s121_s2 + $0x8] ss:$0 sm:$0xff]  ;;  %s73_s1 = smov 116  }
   0x2   :  { %17 = vrot.lane.b32.xlu0 %v15_v0, %s72_s14  ;;  %v22_v1 = vld [vmem:[%s121_s2] sm:$0xff] }
   0x3   :  { %44 = vmatpush.msra.mxu0 %v22_v1  ;;  %v14_v2 = vld [vmem:[%s122_s0] sm:$0xff] }
  0x74   :  { %v18_v3 = vpop.permute.xlu0 %17 }
  0x75   :  { %v21_v4 = vsel %vm20_vm0, %v14_v2, %v18_v3 }
  0x76   :  { %65 = vmatmul.msk.f32.vlgmr.msra.gmra.mxu0 %vm25_vm1, %v21_v4 }
  0xf3   :  { %v46_v6 = vpop.f32.mrf.mxu0 }
  0xf4   :  { %v47_v7 = vadd.f32 %v71_v5, %v46_v6 }
  0xf6   :  { %56 = vrot.lane.b32.xlu1 %v47_v7, %s73_s1  ;;  %50 = vrot.lane.b32.xlu0 %v47_v7, %s74_s21  ;;  %55 = vst.msk [vmem:[%s123_s3] sm:$0xff] %vm20_vm0, %v47_v7 }
 0x168   :  { %v57_v8 = vpop.permute.xlu1 %56  ;;  %v51_v9 = vpop.permute.xlu0 %50 }
 0x169   :  { %67 = vst.msk [vmem:[%s123_s3 + $0x8] sm:$0xff] %vm20_vm0, %v57_v8 }
 0x16a   :  { %66 = vst.msk [vmem:[%s123_s3 + $0x10] sm:$0xff] %vm20_vm0, %v51_v9 }

</bundles_post_ra>
